<compile_context>
chip_gen: v5e
topology: v5e:2x2
jax: 0.10.0
libtpu: 0.0.40
codegen_flags: <defaults>
</compile_context>

<pallas_src>
import jax
import jax.numpy as jnp
from jax.experimental import pallas as pl
from jax.experimental.pallas import tpu as pltpu

BN_EPS = 1e-5
TM = 512        # rows per tile (multiple of 8); safe for v7x's 64 MiB VMEM,
                # raise to 1024-2048 for large shapes on v5e/v6e.
LANES = 128


def _round_up(a, b):
    return ((a + b - 1) // b) * b


# -------- pass 1: conv tile + per-channel sum / sum-of-squares (BN stats) ----
def stats_kernel(xcol_ref, w_ref, sum_ref, sq_ref):
    # xcol_ref: (TM, Kp) bf16   w_ref: (Kp, Cpad) bf16
    # sum_ref / sq_ref: (1, Cpad) f32 accumulators, resident across the grid
    @pl.when(pl.program_id(0) == 0)
    def _():
        sum_ref[...] = jnp.zeros_like(sum_ref)
        sq_ref[...] = jnp.zeros_like(sq_ref)

    conv = jnp.dot(xcol_ref[...], w_ref[...],
                   preferred_element_type=jnp.float32)          # MXU, f32 acc
    sum_ref[...] += jnp.sum(conv, axis=0, keepdims=True)
    sq_ref[...] += jnp.sum(conv * conv, axis=0, keepdims=True)


# -------- pass 2: conv tile + folded BN affine + ReLU ------------------------
def apply_kernel(xcol_ref, w_ref, scale_ref, shift_ref, o_ref):
    conv = jnp.dot(xcol_ref[...], w_ref[...],
                   preferred_element_type=jnp.float32)
    o_ref[...] = jnp.maximum(conv * scale_ref[...] + shift_ref[...], 0.0)


def conv_block_forward(x, w, b, gamma, beta):
    """x: (N, Cin, D, H, W) f32; w: (Cout, Cin, 3, 3, 3); b/gamma/beta: (Cout,).

    Returns (N, Cout, D, H, W) f32 (NCDHW, matching the PyTorch module).
    """
    del b  # conv bias is cancelled exactly by training-mode BatchNorm
    N, Cin, D, H, W = x.shape
    Cout = w.shape[0]
    K = Cin * 27
    M = N * D * H * W
    Kp = _round_up(K, LANES)         # pad contraction dim to full MXU width
    Cpad = _round_up(Cout, LANES)    # lane-dense output channels
    Mpad = _round_up(M, TM)

    # --- glue: im2col (zero padding = 1 per spatial side), cin-major K ---
    xp = jnp.pad(x, ((0, 0), (0, 0), (1, 1), (1, 1), (1, 1)))
    patches = []
    for kd in range(3):
        for kh in range(3):
            for kw in range(3):
                patches.append(xp[:, :, kd:kd + D, kh:kh + H, kw:kw + W])
    # (27, N, Cin, D, H, W) -> (N, D, H, W, Cin, 27) -> (M, K)
    xcol = jnp.stack(patches, axis=0).transpose(1, 3, 4, 5, 2, 0).reshape(M, K)
    # zero-pad rows (M -> Mpad) and contraction (K -> Kp); bf16 MXU operands
    xcol = jnp.pad(xcol, ((0, Mpad - M), (0, Kp - K))).astype(jnp.bfloat16)
    wcol = jnp.pad(w.reshape(Cout, K).T,
                   ((0, Kp - K), (0, Cpad - Cout))).astype(jnp.bfloat16)

    grid = (Mpad // TM,)
    xcol_spec = pl.BlockSpec((TM, Kp), lambda i: (i, 0))
    w_spec = pl.BlockSpec((Kp, Cpad), lambda i: (0, 0))
    vec_spec = pl.BlockSpec((1, Cpad), lambda i: (0, 0))

    # ----- pass 1: per-channel batch statistics (sum, sum of squares) -----
    csum, csq = pl.pallas_call(
        stats_kernel,
        out_shape=(jax.ShapeDtypeStruct((1, Cpad), jnp.float32),
                   jax.ShapeDtypeStruct((1, Cpad), jnp.float32)),
        grid=grid,
        in_specs=[xcol_spec, w_spec],
        out_specs=(vec_spec, vec_spec),
        compiler_params=pltpu.CompilerParams(
            dimension_semantics=("arbitrary",)),
    )(xcol, wcol)

    # fold BN into a per-channel affine (tiny XLA ops; divide by the true M:
    # padded rows contribute exactly 0 since the conv bias was dropped)
    mean = csum / M
    var = jnp.maximum(csq / M - mean * mean, 0.0)
    inv_std = jax.lax.rsqrt(var + BN_EPS)
    g_p = jnp.pad(gamma, (0, Cpad - Cout)).reshape(1, Cpad)
    be_p = jnp.pad(beta, (0, Cpad - Cout)).reshape(1, Cpad)
    scale = (g_p * inv_std).astype(jnp.float32)
    shift = (be_p - mean * g_p * inv_std).astype(jnp.float32)

    # ----- pass 2: recompute conv tile, normalize + ReLU (parallel over M) --
    out = pl.pallas_call(
        apply_kernel,
        out_shape=jax.ShapeDtypeStruct((Mpad, Cpad), jnp.float32),
        grid=grid,
        in_specs=[xcol_spec, w_spec, vec_spec, vec_spec],
        out_specs=pl.BlockSpec((TM, Cpad), lambda i: (i, 0)),
        compiler_params=pltpu.CompilerParams(
            dimension_semantics=("parallel",)),
    )(xcol, wcol, scale, shift)

    # back to NCDHW. (If the consumer accepts channels-last NDHWC, return
    # out[:M, :Cout].reshape(N, D, H, W, Cout) directly and skip this
    # transpose — it is a pure HBM round-trip.)
    y = out[:M, :Cout].reshape(N, D, H, W, Cout).transpose(0, 4, 1, 2, 3)
    return y


def reference_forward(x, w, b, gamma, beta):
    Cout = w.shape[0]
    conv = jax.lax.conv_general_dilated(
        x, w, window_strides=(1, 1, 1), padding="SAME",
        dimension_numbers=("NCDHW", "OIDHW", "NCDHW"))
    conv = conv + b.reshape(1, Cout, 1, 1, 1)
    mean = conv.mean(axis=(0, 2, 3, 4), keepdims=True)
    var = jnp.square(conv - mean).mean(axis=(0, 2, 3, 4), keepdims=True)
    xhat = (conv - mean) / jnp.sqrt(var + BN_EPS)
    y = gamma.reshape(1, Cout, 1, 1, 1) * xhat + beta.reshape(1, Cout, 1, 1, 1)
    return jnp.maximum(y, 0.0)


if __name__ == "__main__":
    # small shapes consistent with Conv3d: (N, Cin, D, H, W); M = 1024 -> 2 tiles
    N, Cin, Cout, D, H, W = 2, 4, 8, 8, 8, 8

    key = jax.random.PRNGKey(0)
    kx, kw, kb = jax.random.split(key, 3)
    x = jax.random.normal(kx, (N, Cin, D, H, W), dtype=jnp.float32)
    fan_in = Cin * 27
    w = jax.random.normal(kw, (Cout, Cin, 3, 3, 3), dtype=jnp.float32) / jnp.sqrt(fan_in)
    b = jax.random.normal(kb, (Cout,), dtype=jnp.float32) * 0.1
    gamma = jnp.ones((Cout,), dtype=jnp.float32)   # BatchNorm3d default init
    beta = jnp.zeros((Cout,), dtype=jnp.float32)

    y = conv_block_forward(x, w, b, gamma, beta)
    jax.block_until_ready(y)

    y_ref = reference_forward(x, w, b, gamma, beta)
    assert y.shape == (N, Cout, D, H, W)
    # bf16 matmul operands (f32 accumulation) -> slightly looser tolerance
    assert jnp.allclose(y, y_ref, atol=2e-2, rtol=2e-2)

    print("KERNEL_OK")
</pallas_src>

<mosaic_0001>
module attributes {stable_mosaic.version = 11 : i64} {
  func.func @stats_kernel(%arg0: i32, %arg1: memref<512x128xbf16, #tpu.memory_space<vmem>>, %arg2: memref<128x128xbf16, #tpu.memory_space<vmem>>, %arg3: memref<1x128xf32, #tpu.memory_space<vmem>>, %arg4: memref<1x128xf32, #tpu.memory_space<vmem>>) attributes {dimension_semantics = [#tpu.dimension_semantics<arbitrary>], iteration_bounds = array<i64: 2>, scalar_prefetch = 0 : i64, scratch_operands = 0 : i64, tpu.core_type = #tpu.core_type<tc>, window_params = [{transform_indices = @transform_0, window_bounds = array<i64: 512, 128>}, {pipeline_mode = #tpu.pipeline_mode<synchronous>, transform_indices = @transform_1, window_bounds = array<i64: 128, 128>}, {pipeline_mode = #tpu.pipeline_mode<synchronous>, transform_indices = @transform_2, window_bounds = array<i64: 1, 128>}, {pipeline_mode = #tpu.pipeline_mode<synchronous>, transform_indices = @transform_3, window_bounds = array<i64: 1, 128>}]} {
    %c0_i32 = arith.constant 0 : i32
    %0 = arith.cmpi eq, %arg0, %c0_i32 : i32
    %1 = arith.extui %0 : i1 to i32
    %c0_i32_0 = arith.constant 0 : i32
    %2 = arith.cmpi ne, %1, %c0_i32_0 : i32
    scf.if %2 {
      %cst_14 = arith.constant 0.000000e+00 : f32
      %17 = vector.broadcast %cst_14 : f32 to vector<1x128xf32>
      %c0_15 = arith.constant 0 : index
      %c0_16 = arith.constant 0 : index
      %18 = vector.load %arg3[%c0_15, %c0_16] : memref<1x128xf32, #tpu.memory_space<vmem>>, vector<1x128xf32>
      tpu.vector_store %arg3[%c0_15, %c0_16], %17 {strides = array<i32>} : memref<1x128xf32, #tpu.memory_space<vmem>>, vector<1x128xf32>,
      %cst_17 = arith.constant 0.000000e+00 : f32
      %19 = vector.broadcast %cst_17 : f32 to vector<1x128xf32>
      %c0_18 = arith.constant 0 : index
      %c0_19 = arith.constant 0 : index
      %20 = vector.load %arg4[%c0_18, %c0_19] : memref<1x128xf32, #tpu.memory_space<vmem>>, vector<1x128xf32>
      tpu.vector_store %arg4[%c0_18, %c0_19], %19 {strides = array<i32>} : memref<1x128xf32, #tpu.memory_space<vmem>>, vector<1x128xf32>,
    } else {
    }
    %c0 = arith.constant 0 : index
    %c0_1 = arith.constant 0 : index
    %3 = vector.load %arg1[%c0, %c0_1] : memref<512x128xbf16, #tpu.memory_space<vmem>>, vector<512x128xbf16>
    %c0_2 = arith.constant 0 : index
    %c0_3 = arith.constant 0 : index
    %4 = vector.load %arg2[%c0_2, %c0_3] : memref<128x128xbf16, #tpu.memory_space<vmem>>, vector<128x128xbf16>
    %cst = arith.constant dense<0.000000e+00> : vector<512x128xf32>
    %5 = tpu.matmul %3, %4, %cst {dimension_numbers = #tpu.dot_dimension_numbers<[1], [0], [0], [1], [0, 0, 1, 1], [], []>} : vector<512x128xbf16>, vector<128x128xbf16>, vector<512x128xf32> -> vector<512x128xf32>
    %c0_4 = arith.constant 0 : index
    %c0_5 = arith.constant 0 : index
    %6 = vector.load %arg3[%c0_4, %c0_5] : memref<1x128xf32, #tpu.memory_space<vmem>>, vector<1x128xf32>
    %cst_6 = arith.constant dense<0.000000e+00> : vector<128xf32>
    %7 = vector.multi_reduction <add>, %5, %cst_6 [0] : vector<512x128xf32> to vector<128xf32>
    %8 = vector.shape_cast %7 : vector<128xf32> to vector<1x128xf32>
    %9 = arith.addf %6, %8 : vector<1x128xf32>
    %c0_7 = arith.constant 0 : index
    %c0_8 = arith.constant 0 : index
    %10 = vector.load %arg3[%c0_7, %c0_8] : memref<1x128xf32, #tpu.memory_space<vmem>>, vector<1x128xf32>
    tpu.vector_store %arg3[%c0_7, %c0_8], %9 {strides = array<i32>} : memref<1x128xf32, #tpu.memory_space<vmem>>, vector<1x128xf32>,
    %c0_9 = arith.constant 0 : index
    %c0_10 = arith.constant 0 : index
    %11 = vector.load %arg4[%c0_9, %c0_10] : memref<1x128xf32, #tpu.memory_space<vmem>>, vector<1x128xf32>
    %12 = arith.mulf %5, %5 : vector<512x128xf32>
    %cst_11 = arith.constant dense<0.000000e+00> : vector<128xf32>
    %13 = vector.multi_reduction <add>, %12, %cst_11 [0] : vector<512x128xf32> to vector<128xf32>
    %14 = vector.shape_cast %13 : vector<128xf32> to vector<1x128xf32>
    %15 = arith.addf %11, %14 : vector<1x128xf32>
    %c0_12 = arith.constant 0 : index
    %c0_13 = arith.constant 0 : index
    %16 = vector.load %arg4[%c0_12, %c0_13] : memref<1x128xf32, #tpu.memory_space<vmem>>, vector<1x128xf32>
    tpu.vector_store %arg4[%c0_12, %c0_13], %15 {strides = array<i32>} : memref<1x128xf32, #tpu.memory_space<vmem>>, vector<1x128xf32>,
    return
  }
  func.func @transform_0(%arg0: i32) -> (i32, i32) {
    %c0_i32 = arith.constant 0 : i32
    %c0_i32_0 = arith.constant 0 : i32
    return %arg0, %c0_i32 : i32, i32
  }
  func.func @transform_1(%arg0: i32) -> (i32, i32) {
    %c0_i32 = arith.constant 0 : i32
    %c0_i32_0 = arith.constant 0 : i32
    %c0_i32_1 = arith.constant 0 : i32
    return %c0_i32, %c0_i32_0 : i32, i32
  }
  func.func @transform_2(%arg0: i32) -> (i32, i32) {
    %c0_i32 = arith.constant 0 : i32
    %c0_i32_0 = arith.constant 0 : i32
    %c0_i32_1 = arith.constant 0 : i32
    return %c0_i32, %c0_i32_0 : i32, i32
  }
  func.func @transform_3(%arg0: i32) -> (i32, i32) {
    %c0_i32 = arith.constant 0 : i32
    %c0_i32_0 = arith.constant 0 : i32
    %c0_i32_1 = arith.constant 0 : i32
    return %c0_i32, %c0_i32_0 : i32, i32
  }
}

</mosaic_0001>

<bundles_post_ra>
// kernel: tpu_custom_call.1
= control target key start
LH: loop header
LB: loop body
LE: loop exit
PB: predicated region body
PF: predicated region fallthrough
CT: control target
= control target key end

     0   :  { %9 = vsyncpa [#allocation3], 0  ;;  %s1821_s0 = inlined_call_operand.hbm [shape: bf16[1024,128], index: 0, kind: input, shape index: {}]   ;;  %s1822_s1 = inlined_call_operand.hbm [shape: bf16[128,128], index: 1, kind: input, shape index: {}]   ;;  %s1823_s2 = inlined_call_operand.hbm [shape: f32[1,128], index: 2, kind: output, shape index: {0}]   ;;  %s1824_s3 = inlined_call_operand.hbm [shape: f32[1,128], index: 3, kind: output, shape index: {1}]  }
   0x1   :  { %11 = vsyncpa [#allocation3 + $0x1], 0 }
   0x2   :  { %12 = vsyncpa [#allocation6], 0 }
   0x3   :  { %13 = vsyncpa [#allocation4], 0 }
   0x4   :  { %14 = vsyncpa [#allocation9], 0  ;;  %s1491_s12 = smov 0   ;;  %s1493_s13 = smov 0  }
   0x5   :  { %s1495_s14 = smov 0   ;;  %s1497_s15 = smov 0  }
   0x6 LB: > { %s1510_s16 = sadd.s32 4294967295, %s1463_s15   ;;  %p40_p0 = scmp.ne.s32.totalorder %s1455_s13, %s1451_s12  ;;  %s1463_s15 = sphi %s1497_s15, %s1831_s15   ;;  %s1459_s14 = sphi %s1495_s14, %s1830_s14   ;;  %s1455_s13 = sphi %s1493_s13, %s1829_s13   ;;  %s1451_s12 = sphi %s1491_s12, %s1828_s12  }
   0x7   : > { %p41_p1 = scmp.eq.s32.totalorder %s1510_s16, 0  ;;  %p993_p2 = scmp.ge.s32.totalorder %s1463_s15, 1 }
   0x8   : > { %p114_p3 = scmp.lt.s32.totalorder %s1463_s15, 3  ;;  %p994_p4 = scmp.ne.s32.totalorder %s1510_s16, 0 }
   0x9   : > { %p1519_p5 = por %p41_p1, %p40_p0  ;;  %s125_s20 = sshll.u32 %s1822_s1, 4  ;;  %s126_s20 = int_to_ptr.hbm [resolvable:$true] %s125_s20 }
   0xa   : > { %p1526_p6 = pnand %p993_p2, %p114_p3  ;;  %s1465_s22 = smov [#allocation5]  }
   0xb   : > { %s127_s23 = sshll.u32 %s1465_s22, 4  ;;  %s1535_s24 = sadd.s32 1, %s1463_s15   ;;  %s128_s23 = int_to_ptr.vmem [resolvable:$true] %s127_s23 }
   0xc   : > { %p1248_p7 = pneg %p1526_p6  ;;  %s1466_s25 = smov 64  }
   0xd   : > { %s1467_s26 = smov 4   ;;  %s24_s27 = ssub.s32 %s1463_s15, %s1535_s24 }
   0xe   : > { %p1249_p8 = pnand %p1248_p7, %p41_p1  ;;  %s27_s28 = sadd.s32 1, %s1459_s14 }
   0xf   : > { %p25_p9 = scmp.eq.s32.totalorder %s24_s27, 0  ;;  %p34_p10 = scmp.ne.s32.totalorder %s1459_s14, %s1455_s13 }
  0x10   : > { %1251 = dma.hbm_to_vmem [thread:$0]  (!%p1249_p8), %s126_s20, 1024, %s128_s23, [#allocation6], %s1466_s25, %s1466_s25, %s1467_s26  }
  0x11   : > { %p35_p11 = scmp.eq.s32.totalorder %s1463_s15, 0  ;;  %p1257_p12 = scmp.lt.s32.totalorder %s1463_s15, 2 }
  0x12   : > { %s1548_s29 = scalar_select %p25_p9, %s1459_s14, %s27_s28  }
  0x13   : > { %p36_p13 = por %p35_p11, %p34_p10  ;;  %s141_s30 = sand.u32 1, %s1459_s14  }
  0x14   : > { %s996_s4 = sshll.u32 %s141_s30, 8  ;;  %s1169_s5 = sshll.u32 %s1463_s15, 8 }
  0x15   : > { %s150_s8 = scalar_lea.hbm %s1821_s0, %s1169_s5  ;;  %s145_s9 = scalar_lea.vmem [#allocation2], %s996_s4 }
  0x16   : > { %s153_s10 = sshll.u32 %s145_s9, 4  ;;  %s151_s11 = sshll.u32 %s150_s8, 4  ;;  %s154_s10 = int_to_ptr.vmem [resolvable:$true] %s153_s10  ;;  %s152_s11 = int_to_ptr.hbm [resolvable:$true] %s151_s11 }
  0x17   : > { %p1555_p0 = pnand %p1257_p12, %p36_p13  ;;  %s142_s18 = scalar_lea.sflag [#allocation3], %s141_s30 }
  0x18   : > { %s1331_s19 = sshra.s32 %s152_s11, 4  ;;  %s1338_s23 = scalar_lea.hbm %s1821_s0, 512  ;;  %s1332_s19 = int_to_ptr.hbm [resolvable:$true] %s1331_s19 }
  0x19   : > { %s1333_s20 = scalar_lea.hbm %s1332_s19, 256  ;;  %p1335_p3 = pneg %p1555_p0 }
  0x1a   : > { %p1334_p2 = scmp.ne.s32.totalorder %s1332_s19, %s1333_s20  ;;  %p1339_p9 = scmp.lt.s32.totalorder %s1332_s19, %s1821_s0 }
  0x1b   : > { %p1340_p10 = scmp.lt.s32.totalorder %s1338_s23, %s1333_s20 }
  0x1c   : > { %p1336_p7 = pnand %p1335_p3, %p1334_p2 }
  0x1d   : > { %p1341_p11 = por %p1340_p10, %p1339_p9 }
  0x1e   : > { %p1337_p8 = pneg %p1336_p7 }
  0x20   : > { %p1342_p12 = pnand %p1341_p11, %p1337_p8 }
  0x22   : > { %1345 = shalt.err (!%p1342_p12)
}
  0x23   : > { %1255 = dma.hbm_to_vmem [thread:$0]  (!%p1555_p0), %s152_s11, 4096, %s154_s10, %s142_s18, %s1466_s25, %s1466_s25, %s1467_s26  }
  0x24   : > { %165 = sbr.rel (%p1526_p6) target bundleno = 450 (0x1c2), region = 28  ;;  %s167_s30 = sand.u32 (!%p1526_p6), 1, %s1455_s13  }
  0x25   : > { %s1000_s4 = sshll.u32 (!%p1526_p6), %s167_s30, 8  ;;  %s168_s5 = scalar_lea.sflag (!%p1526_p6), [#allocation3], %s167_s30 }
  0x26   : > { %s1575_s6 = scalar_lea.vmem (!%p1526_p6), [#allocation2], %s1000_s4 }
  0x29   : > { %1434 = dma.done.wait (%p1519_p5), %s168_s5, 4096  }
  0x2a   : > { %1436 = vsyncadd (%p1519_p5), %s168_s5, 4294963200 }
  0x2b   : > { %1438 = dma.done.wait (%p41_p1), [#allocation6], 1024  }
  0x2c   : > { %1440 = vsyncadd (%p41_p1), [#allocation6], 4294966272  ;;  %199 = sbr.rel (%p994_p4) target bundleno = 52 (0x34), region = 40 }
  0x31   : > { %v1468_v0 = vmov 0.0  }
  0x32   : > { %200 = vst [vmem:[#allocation7] sm:$0x1] %v1468_v0 }
  0x33   : > { %201 = vst [vmem:[#allocation8] sm:$0x1] %v1468_v0 }
  0x34 PF: > { %v1209_v1 = vld [vmem:[#allocation5 + $0x38] sm:$0xff]  ;;  %v1208_v2 = vld [vmem:[#allocation5 + $0x30] sm:$0xff]  ;;  %v1207_v3 = vld [vmem:[#allocation5 + $0x28] sm:$0xff]  ;;  %s1469_s17 = smov [#allocation7]   ;;  %s907_s7 = sshll.u32 %s1823_s2, 4  ;;  %s908_s7 = int_to_ptr.hbm [resolvable:$true] %s907_s7 }
  0x35   : > { %522 = vmatpush.bf16.msra.mxu0 %v1209_v1  ;;  %1210 = vmatpush.bf16.msra.mxu1 %v1209_v1  ;;  %v1206_v4 = vld [vmem:[#allocation5 + $0x20] sm:$0xff]  ;;  %v1205_v5 = vld [vmem:[#allocation5 + $0x18] sm:$0xff]  ;;  %v1204_v6 = vld [vmem:[#allocation5 + $0x10] sm:$0xff]  ;;  %s905_s21 = sshll.u32 %s1469_s17, 4  ;;  %p1259_p1 = scmp.eq.s32.totalorder %s1510_s16, 1  ;;  %s906_s21 = int_to_ptr.vmem [resolvable:$true] %s905_s21 }
  0x36   : > { %1211 = vmatpush.bf16.msra.mxu2 %v1209_v1  ;;  %1212 = vmatpush.bf16.msra.mxu3 %v1209_v1  ;;  %v1203_v7 = vld [vmem:[#allocation5 + $0x8] sm:$0xff]  ;;  %v1202_v8 = vld [vmem:[#allocation5] sm:$0xff]  ;;  %v1172_v14 = vld [vmem:[%s1575_s6 + $0x10] sm:$0xff]  ;;  %s1470_s8 = smov [#allocation8]   ;;  %s919_s12 = sshll.u32 %s1824_s3, 4  ;;  %s920_s12 = int_to_ptr.hbm [resolvable:$true] %s919_s12 }
  0x37   : > { %v1170_v9 = vld [vmem:[%s1575_s6] sm:$0xff]  ;;  %v1171_v11 = vld [vmem:[%s1575_s6 + $0x8] sm:$0xff]  ;;  %v1180_v15 = vld [vmem:[%s1575_s6 + $0x50] sm:$0xff]  ;;  %s917_s9 = sshll.u32 %s1470_s8, 4  ;;  %s918_s9 = int_to_ptr.vmem [resolvable:$true] %s917_s9 }
  0x38   : > { %v1178_v10 = vld [vmem:[%s1575_s6 + $0x40] sm:$0xff]  ;;  %v1179_v12 = vld [vmem:[%s1575_s6 + $0x48] sm:$0xff]  ;;  %v1173_v17 = vld [vmem:[%s1575_s6 + $0x18] sm:$0xff] }
  0x39   : > { %523 = vmatpush.bf16.msra.mxu0 %v1208_v2  ;;  %1213 = vmatpush.bf16.msra.mxu1 %v1208_v2  ;;  %v1186_v13 = vld [vmem:[%s1575_s6 + $0x80] sm:$0xff]  ;;  %v1187_v16 = vld [vmem:[%s1575_s6 + $0x88] sm:$0xff]  ;;  %v1181_v18 = vld [vmem:[%s1575_s6 + $0x58] sm:$0xff] }
  0x3a   : > { %1214 = vmatpush.bf16.msra.mxu2 %v1208_v2  ;;  %1215 = vmatpush.bf16.msra.mxu3 %v1208_v2  ;;  %v1188_v19 = vld [vmem:[%s1575_s6 + $0x90] sm:$0xff]  ;;  %v1194_v20 = vld [vmem:[%s1575_s6 + $0xc0] sm:$0xff]  ;;  %v1189_v23 = vld [vmem:[%s1575_s6 + $0x98] sm:$0xff] }
  0x3b   : > { %v1174_v21 = vld [vmem:[%s1575_s6 + $0x20] sm:$0xff]  ;;  %v1195_v24 = vld [vmem:[%s1575_s6 + $0xc8] sm:$0xff]  ;;  %v1196_v28 = vld [vmem:[%s1575_s6 + $0xd0] sm:$0xff] }
  0x3c   : > { %v1182_v22 = vld [vmem:[%s1575_s6 + $0x60] sm:$0xff]  ;;  %v1175_v25 = vld [vmem:[%s1575_s6 + $0x28] sm:$0xff]  ;;  %v1176_v29 = vld [vmem:[%s1575_s6 + $0x30] sm:$0xff] }
  0x3d   : > { %524 = vmatpush.bf16.msra.mxu0 %v1207_v3  ;;  %1216 = vmatpush.bf16.msra.mxu1 %v1207_v3  ;;  %v1183_v26 = vld [vmem:[%s1575_s6 + $0x68] sm:$0xff]  ;;  %v1190_v27 = vld [vmem:[%s1575_s6 + $0xa0] sm:$0xff]  ;;  %v1184_v30 = vld [vmem:[%s1575_s6 + $0x70] sm:$0xff] }
  0x3e   : > { %1217 = vmatpush.bf16.msra.mxu2 %v1207_v3  ;;  %1218 = vmatpush.bf16.msra.mxu3 %v1207_v3  ;;  %v1191_v31 = vld [vmem:[%s1575_s6 + $0xa8] sm:$0xff]  ;;  %v1197_v32 = vld [vmem:[%s1575_s6 + $0xd8] sm:$0xff]  ;;  %v1192_v35 = vld [vmem:[%s1575_s6 + $0xb0] sm:$0xff] }
  0x3f   : > { %v1177_v33 = vld [vmem:[%s1575_s6 + $0x38] sm:$0xff]  ;;  %v1198_v36 = vld [vmem:[%s1575_s6 + $0xe0] sm:$0xff]  ;;  %v1199_v40 = vld [vmem:[%s1575_s6 + $0xe8] sm:$0xff] }
  0x40   : > { %v1185_v34 = vld [vmem:[%s1575_s6 + $0x78] sm:$0xff]  ;;  %v1200_v51 = vld [vmem:[%s1575_s6 + $0xf0] sm:$0xff] }
  0x41   : > { %525 = vmatpush.bf16.msra.mxu0 %v1206_v4  ;;  %1219 = vmatpush.bf16.msra.mxu1 %v1206_v4  ;;  %v1193_v39 = vld [vmem:[%s1575_s6 + $0xb8] sm:$0xff] }
  0x42   : > { %1220 = vmatpush.bf16.msra.mxu2 %v1206_v4  ;;  %1221 = vmatpush.bf16.msra.mxu3 %v1206_v4  ;;  %v1201_v63 = vld [vmem:[%s1575_s6 + $0xf8] sm:$0xff] }
  0x45   : > { %526 = vmatpush.bf16.msra.mxu0 %v1205_v5  ;;  %1222 = vmatpush.bf16.msra.mxu1 %v1205_v5 }
  0x46   : > { %1223 = vmatpush.bf16.msra.mxu2 %v1205_v5  ;;  %1224 = vmatpush.bf16.msra.mxu3 %v1205_v5 }
  0x49   : > { %527 = vmatpush.bf16.msra.mxu0 %v1204_v6  ;;  %1225 = vmatpush.bf16.msra.mxu1 %v1204_v6 }
  0x4a   : > { %1226 = vmatpush.bf16.msra.mxu2 %v1204_v6  ;;  %1227 = vmatpush.bf16.msra.mxu3 %v1204_v6 }
  0x4d   : > { %528 = vmatpush.bf16.msra.mxu0 %v1203_v7  ;;  %1228 = vmatpush.bf16.msra.mxu1 %v1203_v7 }
  0x4e   : > { %1229 = vmatpush.bf16.msra.mxu2 %v1203_v7  ;;  %1230 = vmatpush.bf16.msra.mxu3 %v1203_v7 }
  0x51   : > { %529 = vmatpush.bf16.msra.mxu0 %v1202_v8  ;;  %1231 = vmatpush.bf16.msra.mxu1 %v1202_v8 }
  0x52   : > { %1232 = vmatpush.bf16.msra.mxu2 %v1202_v8  ;;  %1233 = vmatpush.bf16.msra.mxu3 %v1202_v8 }
  0x54   : > { %530 = vmatmul.bf16.vlgmr.msra.gmra.mxu0 %v1170_v9  ;;  %570 = vmatmul.bf16.vlgmr.msra.gmra.mxu1 %v1178_v10 }
  0x55   : > { %610 = vmatmul.bf16.vlgmr.msra.gmra.mxu2 %v1186_v13  ;;  %650 = vmatmul.bf16.vlgmr.msra.gmra.mxu3 %v1194_v20 }
  0x64   : > { %535 = vmatmul.bf16.gmra.mxu0 %v1171_v11  ;;  %575 = vmatmul.bf16.gmra.mxu1 %v1179_v12 }
  0x65   : > { %615 = vmatmul.bf16.gmra.mxu2 %v1187_v16  ;;  %655 = vmatmul.bf16.gmra.mxu3 %v1195_v24 }
  0x74   : > { %540 = vmatmul.bf16.gmra.mxu0 %v1172_v14  ;;  %580 = vmatmul.bf16.gmra.mxu1 %v1180_v15 }
  0x75   : > { %620 = vmatmul.bf16.gmra.mxu2 %v1188_v19  ;;  %660 = vmatmul.bf16.gmra.mxu3 %v1196_v28 }
  0x84   : > { %545 = vmatmul.bf16.gmra.mxu0 %v1173_v17  ;;  %585 = vmatmul.bf16.gmra.mxu1 %v1181_v18 }
  0x85   : > { %625 = vmatmul.bf16.gmra.mxu2 %v1189_v23  ;;  %665 = vmatmul.bf16.gmra.mxu3 %v1197_v32 }
  0x94   : > { %550 = vmatmul.bf16.gmra.mxu0 %v1174_v21  ;;  %590 = vmatmul.bf16.gmra.mxu1 %v1182_v22 }
  0x95   : > { %630 = vmatmul.bf16.gmra.mxu2 %v1190_v27  ;;  %670 = vmatmul.bf16.gmra.mxu3 %v1198_v36 }
  0xa4   : > { %555 = vmatmul.bf16.gmra.mxu0 %v1175_v25  ;;  %595 = vmatmul.bf16.gmra.mxu1 %v1183_v26 }
  0xa5   : > { %635 = vmatmul.bf16.gmra.mxu2 %v1191_v31  ;;  %675 = vmatmul.bf16.gmra.mxu3 %v1199_v40 }
  0xb4   : > { %560 = vmatmul.bf16.gmra.mxu0 %v1176_v29  ;;  %600 = vmatmul.bf16.gmra.mxu1 %v1184_v30 }
  0xb5   : > { %640 = vmatmul.bf16.gmra.mxu2 %v1192_v35  ;;  %680 = vmatmul.bf16.gmra.mxu3 %v1200_v51 }
  0xc4   : > { %565 = vmatmul.bf16.gmra.mxu0 %v1177_v33  ;;  %605 = vmatmul.bf16.gmra.mxu1 %v1185_v34 }
  0xc5   : > { %645 = vmatmul.bf16.gmra.mxu2 %v1193_v39  ;;  %685 = vmatmul.bf16.gmra.mxu3 %v1201_v63 }
  0xd1   : > { %v531_v37 = vpop.f32.mrf.mxu0  ;;  %v1615_v38 = vpop.f32.mrf.mxu1 }
  0xd2   : > { %v764_v42 = vmul.f32 %v531_v37, %v531_v37 }
  0xd8   : > { %v1626_v59 = vpop.f32.mrf.mxu2  ;;  %v1641_v10 = vpop.f32.mrf.mxu3 }
  0xd9   : > { %v533_v41 = vpop.f32.mrf.mxu0  ;;  %v1619_v45 = vpop.f32.mrf.mxu1 }
  0xda   : > { %v692_v43 = vadd.f32 %v533_v41, %v531_v37  ;;  %v765_v44 = vmul.f32 %v533_v41, %v533_v41 }
  0xdc   : > { %v828_v46 = vadd.f32 %v765_v44, %v764_v42 }
  0xe0   : > { %v1631_v2 = vpop.f32.mrf.mxu2  ;;  %v1647_v14 = vpop.f32.mrf.mxu3 }
  0xe1   : > { %v536_v47 = vpop.f32.mrf.mxu0  ;;  %v1622_v52 = vpop.f32.mrf.mxu1 }
  0xe2   : > { %v693_v48 = vadd.f32 %v692_v43, %v536_v47  ;;  %v766_v49 = vmul.f32 %v536_v47, %v536_v47 }
  0xe4   : > { %v829_v50 = vadd.f32 %v828_v46, %v766_v49 }
  0xe8   : > { %v1635_v5 = vpop.f32.mrf.mxu2  ;;  %v1653_v18 = vpop.f32.mrf.mxu3 }
  0xe9   : > { %v538_v53 = vpop.f32.mrf.mxu0  ;;  %v1624_v57 = vpop.f32.mrf.mxu1 }
  0xea   : > { %v694_v54 = vadd.f32 %v693_v48, %v538_v53  ;;  %v767_v55 = vmul.f32 %v538_v53, %v538_v53 }
  0xec   : > { %v830_v56 = vadd.f32 %v829_v50, %v767_v55 }
  0xf0   : > { %v1639_v8 = vpop.f32.mrf.mxu2  ;;  %v1659_v22 = vpop.f32.mrf.mxu3 }
  0xf1   : > { %v541_v58 = vpop.f32.mrf.mxu0  ;;  %v1629_v1 = vpop.f32.mrf.mxu1 }
  0xf2   : > { %v695_v60 = vadd.f32 %v694_v54, %v541_v58  ;;  %v768_v61 = vmul.f32 %v541_v58, %v541_v58 }
  0xf4   : > { %v831_v62 = vadd.f32 %v830_v56, %v768_v61 }
  0xf8   : > { %v1645_v13 = vpop.f32.mrf.mxu2  ;;  %v1665_v33 = vpop.f32.mrf.mxu3 }
  0xf9   : > { %v543_v0 = vpop.f32.mrf.mxu0  ;;  %v1633_v4 = vpop.f32.mrf.mxu1 }
  0xfa   : > { %v769_v24 = vmul.f32 %v543_v0, %v543_v0  ;;  %v696_v26 = vadd.f32 %v695_v60, %v543_v0 }
  0xfc   : > { %v832_v29 = vadd.f32 %v831_v62, %v769_v24 }
 0x100   : > { %v1651_v17 = vpop.f32.mrf.mxu2  ;;  %v1671_v55 = vpop.f32.mrf.mxu3 }
 0x101   : > { %v546_v3 = vpop.f32.mrf.mxu0  ;;  %v1637_v7 = vpop.f32.mrf.mxu1 }
 0x102   : > { %v770_v27 = vmul.f32 %v546_v3, %v546_v3  ;;  %v697_v30 = vadd.f32 %v696_v26, %v546_v3 }
 0x104   : > { %v833_v34 = vadd.f32 %v832_v29, %v770_v27 }
 0x108   : > { %v1657_v21 = vpop.f32.mrf.mxu2 }
 0x109   : > { %v548_v6 = vpop.f32.mrf.mxu0  ;;  %v1643_v11 = vpop.f32.mrf.mxu1 }
 0x10a   : > { %v771_v31 = vmul.f32 %v548_v6, %v548_v6  ;;  %v698_v35 = vadd.f32 %v697_v30, %v548_v6  ;;  %v781_v30 = vmul.f32 %v1619_v45, %v1619_v45 }
 0x10c   : > { %v834_v37 = vadd.f32 %v833_v34, %v771_v31  ;;  %v782_v34 = vmul.f32 %v1622_v52, %v1622_v52 }
 0x110   : > { %v1663_v28 = vpop.f32.mrf.mxu2 }
 0x111   : > { %v551_v9 = vpop.f32.mrf.mxu0  ;;  %v1649_v16 = vpop.f32.mrf.mxu1 }
 0x112   : > { %v772_v36 = vmul.f32 %v551_v9, %v551_v9  ;;  %v699_v39 = vadd.f32 %v698_v35, %v551_v9 }
 0x114   : > { %v835_v41 = vadd.f32 %v834_v37, %v772_v36  ;;  %v783_v37 = vmul.f32 %v1624_v57, %v1624_v57 }
 0x118   : > { %v1669_v50 = vpop.f32.mrf.mxu2 }
 0x119   : > { %v553_v12 = vpop.f32.mrf.mxu0  ;;  %v1655_v20 = vpop.f32.mrf.mxu1 }
 0x11a   : > { %v773_v40 = vmul.f32 %v553_v12, %v553_v12  ;;  %v700_v42 = vadd.f32 %v699_v39, %v553_v12 }
 0x11c   : > { %v836_v46 = vadd.f32 %v835_v41, %v773_v40  ;;  %v784_v41 = vmul.f32 %v1629_v1, %v1629_v1 }
 0x120   : > { %v1673_v26 = vpop.f32.mrf.mxu2 }
 0x121   : > { %v556_v15 = vpop.f32.mrf.mxu0  ;;  %v1661_v25 = vpop.f32.mrf.mxu1 }
 0x122   : > { %v774_v43 = vmul.f32 %v556_v15, %v556_v15  ;;  %v701_v47 = vadd.f32 %v700_v42, %v556_v15 }
 0x124   : > { %v837_v51 = vadd.f32 %v836_v46, %v774_v43  ;;  %v785_v46 = vmul.f32 %v1633_v4, %v1633_v4 }
 0x128   : > { %v1692_v43 = vpop.f32.mrf.mxu2 }
 0x129   : > { %v558_v19 = vpop.f32.mrf.mxu0  ;;  %v1667_v44 = vpop.f32.mrf.mxu1 }
 0x12a   : > { %v775_v48 = vmul.f32 %v558_v19, %v558_v19  ;;  %v702_v53 = vadd.f32 %v701_v47, %v558_v19  ;;  %v780_v19 = vmul.f32 %v1615_v38, %v1615_v38 }
 0x12c   : > { %v838_v56 = vadd.f32 %v837_v51, %v775_v48 }
 0x131   : > { %v561_v23 = vpop.f32.mrf.mxu0  ;;  %v601_v9 = vpop.f32.mrf.mxu1 }
 0x132   : > { %v776_v54 = vmul.f32 %v561_v23, %v561_v23  ;;  %v703_v58 = vadd.f32 %v702_v53, %v561_v23  ;;  %v1678_v23 = vpop.f32.mrf.mxu3 }
 0x134   : > { %v839_v61 = vadd.f32 %v838_v56, %v776_v54  ;;  %v788_v56 = vmul.f32 %v1649_v16, %v1649_v16 }
 0x139   : > { %v563_v32 = vpop.f32.mrf.mxu0  ;;  %v603_v40 = vpop.f32.mrf.mxu1 }
 0x13a   : > { %v777_v60 = vmul.f32 %v563_v32, %v563_v32  ;;  %v704_v62 = vadd.f32 %v703_v58, %v563_v32  ;;  %v1697_v48 = vpop.f32.mrf.mxu3 }
 0x13c   : > { %v840_v0 = vadd.f32 %v839_v61, %v777_v60  ;;  %v789_v61 = vmul.f32 %v1655_v20, %v1655_v20 }
 0x141   : > { %v566_v49 = vpop.f32.mrf.mxu0  ;;  %v606_v60 = vpop.f32.mrf.mxu1 }
 0x142   : > { %v778_v63 = vmul.f32 %v566_v49, %v566_v49  ;;  %v705_v3 = vadd.f32 %v704_v62, %v566_v49 }
 0x144   : > { %v841_v12 = vadd.f32 %v840_v0, %v778_v63  ;;  %v790_v0 = vmul.f32 %v1661_v25, %v1661_v25 }
 0x149   : > { %v568_v6 = vpop.f32.mrf.mxu0 }
 0x14a   : > { %v706_v15 = vadd.f32 %v705_v3, %v568_v6  ;;  %v779_v24 = vmul.f32 %v568_v6, %v568_v6  ;;  %v1714_v6 = vpop.f32.mrf.mxu3 }
 0x14c   : > { %v707_v27 = vadd.f32 %v706_v15, %v1615_v38  ;;  %v842_v29 = vadd.f32 %v841_v12, %v779_v24 }
 0x14e   : > { %v708_v31 = vadd.f32 %v707_v27, %v1619_v45  ;;  %v843_v32 = vadd.f32 %v842_v29, %v780_v19  ;;  %v792_v19 = vmul.f32 %v601_v9, %v601_v9 }
 0x150   : > { %v709_v35 = vadd.f32 %v708_v31, %v1622_v52  ;;  %v844_v36 = vadd.f32 %v843_v32, %v781_v30  ;;  %v793_v30 = vmul.f32 %v603_v40, %v603_v40  ;;  %v608_v31 = vpop.f32.mrf.mxu1 }
 0x152   : > { %v710_v38 = vadd.f32 %v709_v35, %v1624_v57  ;;  %v845_v39 = vadd.f32 %v844_v36, %v782_v34  ;;  %v786_v57 = vmul.f32 %v1637_v7, %v1637_v7  ;;  %v794_v35 = vmul.f32 %v606_v60, %v606_v60 }
 0x154   : > { %v711_v42 = vadd.f32 %v710_v38, %v1629_v1  ;;  %v846_v45 = vadd.f32 %v845_v39, %v783_v37  ;;  %v787_v1 = vmul.f32 %v1643_v11, %v1643_v11  ;;  %v795_v38 = vmul.f32 %v608_v31, %v608_v31  ;;  %v1719_v39 = vpop.f32.mrf.mxu3 }
 0x156   : > { %v712_v52 = vadd.f32 %v711_v42, %v1633_v4  ;;  %v847_v47 = vadd.f32 %v846_v45, %v784_v41  ;;  %v797_v42 = vmul.f32 %v1631_v2, %v1631_v2 }
 0x158   : > { %v848_v49 = vadd.f32 %v847_v47, %v785_v46  ;;  %v713_v51 = vadd.f32 %v712_v52, %v1637_v7  ;;  %v638_v7 = vpop.f32.mrf.mxu2  ;;  %v798_v46 = vmul.f32 %v1635_v5, %v1635_v5 }
 0x15a   : > { %v714_v53 = vadd.f32 %v713_v51, %v1643_v11  ;;  %v849_v54 = vadd.f32 %v848_v49, %v786_v57  ;;  %v799_v57 = vmul.f32 %v1639_v8, %v1639_v8 }
 0x15c   : > { %v715_v4 = vadd.f32 %v714_v53, %v1649_v16  ;;  %v850_v58 = vadd.f32 %v849_v54, %v787_v1  ;;  %v791_v16 = vmul.f32 %v1667_v44, %v1667_v44  ;;  %v800_v1 = vmul.f32 %v1645_v13, %v1645_v13  ;;  %v1736_v54 = vpop.f32.mrf.mxu3 }
 0x15e   : > { %v716_v62 = vadd.f32 %v715_v4, %v1655_v20  ;;  %v851_v63 = vadd.f32 %v850_v58, %v788_v56  ;;  %v801_v56 = vmul.f32 %v1651_v17, %v1651_v17  ;;  %v802_v58 = vmul.f32 %v1657_v21, %v1657_v21 }
 0x160   : > { %v717_v11 = vadd.f32 %v716_v62, %v1661_v25  ;;  %v852_v3 = vadd.f32 %v851_v63, %v789_v61  ;;  %v641_v25 = vpop.f32.mrf.mxu2  ;;  %v803_v61 = vmul.f32 %v1663_v28, %v1663_v28  ;;  %v804_v63 = vmul.f32 %v1669_v50, %v1669_v50 }
 0x162   : > { %v718_v12 = vadd.f32 %v717_v11, %v1667_v44  ;;  %v853_v15 = vadd.f32 %v852_v3, %v790_v0  ;;  %v796_v44 = vmul.f32 %v1626_v59, %v1626_v59  ;;  %v805_v3 = vmul.f32 %v1673_v26, %v1673_v26 }
 0x164   : > { %v719_v24 = vadd.f32 %v718_v12, %v601_v9  ;;  %v854_v27 = vadd.f32 %v853_v15, %v791_v16  ;;  %v806_v15 = vmul.f32 %v1692_v43, %v1692_v43 }
 0x166   : > { %v855_v20 = vadd.f32 %v854_v27, %v792_v19  ;;  %v720_v29 = vadd.f32 %v719_v24, %v603_v40  ;;  %v807_v27 = vmul.f32 %v638_v7, %v638_v7 }
 0x168   : > { %v856_v32 = vadd.f32 %v855_v20, %v793_v30  ;;  %v721_v34 = vadd.f32 %v720_v29, %v606_v60  ;;  %v808_v30 = vmul.f32 %v641_v25, %v641_v25 }
 0x16a   : > { %v857_v36 = vadd.f32 %v856_v32, %v794_v35  ;;  %v722_v37 = vadd.f32 %v721_v34, %v608_v31 }
 0x16c   : > { %v723_v41 = vadd.f32 %v722_v37, %v1626_v59  ;;  %v858_v9 = vadd.f32 %v857_v36, %v795_v38  ;;  %v643_v59 = vpop.f32.mrf.mxu2 }
 0x16d   : > { %v809_v34 = vmul.f32 %v643_v59, %v643_v59 }
 0x16e   : > { %v724_v40 = vadd.f32 %v723_v41, %v1631_v2  ;;  %v859_v45 = vadd.f32 %v858_v9, %v796_v44 }
 0x170   : > { %v725_v52 = vadd.f32 %v724_v40, %v1635_v5  ;;  %v860_v47 = vadd.f32 %v859_v45, %v797_v42 }
 0x172   : > { %v726_v49 = vadd.f32 %v725_v52, %v1639_v8  ;;  %v861_v51 = vadd.f32 %v860_v47, %v798_v46  ;;  %v814_v46 = vmul.f32 %v1653_v18, %v1653_v18 }
 0x174   : > { %v727_v53 = vadd.f32 %v726_v49, %v1645_v13  ;;  %v862_v2 = vadd.f32 %v861_v51, %v799_v57  ;;  %v815_v57 = vmul.f32 %v1659_v22, %v1659_v22 }
 0x176   : > { %v728_v5 = vadd.f32 %v727_v53, %v1651_v17  ;;  %v863_v4 = vadd.f32 %v862_v2, %v800_v1  ;;  %v646_v17 = vpop.f32.mrf.mxu2  ;;  %v817_v53 = vmul.f32 %v1671_v55, %v1671_v55 }
 0x177   : > { %v810_v37 = vmul.f32 %v646_v17, %v646_v17 }
 0x178   : > { %v864_v8 = vadd.f32 %v863_v4, %v801_v56  ;;  %v729_v60 = vadd.f32 %v728_v5, %v1657_v21  ;;  %v678_v21 = vpop.f32.mrf.mxu3  ;;  %v818_v56 = vmul.f32 %v1678_v23, %v1678_v23  ;;  %v819_v4 = vmul.f32 %v1697_v48, %v1697_v48 }
 0x17a   : > { %v730_v13 = vadd.f32 %v729_v60, %v1663_v28  ;;  %v865_v62 = vadd.f32 %v864_v8, %v802_v58 }
 0x17c   : > { %v731_v0 = vadd.f32 %v730_v13, %v1669_v50  ;;  %v866_v11 = vadd.f32 %v865_v62, %v803_v61  ;;  %v821_v13 = vmul.f32 %v1719_v39, %v1719_v39 }
 0x17e   : > { %v732_v16 = vadd.f32 %v731_v0, %v1673_v26  ;;  %v867_v12 = vadd.f32 %v866_v11, %v804_v63  ;;  %v648_v35 = vpop.f32.mrf.mxu2 }
 0x17f   : > { %v811_v9 = vmul.f32 %v648_v35, %v648_v35 }
 0x180   : > { %v733_v28 = vadd.f32 %v732_v16, %v1692_v43  ;;  %v868_v24 = vadd.f32 %v867_v12, %v805_v3  ;;  %v681_v38 = vpop.f32.mrf.mxu3  ;;  %v812_v43 = vmul.f32 %v1641_v10, %v1641_v10 }
 0x182   : > { %v734_v19 = vadd.f32 %v733_v28, %v638_v7  ;;  %v869_v20 = vadd.f32 %v868_v24, %v806_v15 }
 0x184   : > { %v870_v29 = vadd.f32 %v869_v20, %v807_v27  ;;  %v735_v50 = vadd.f32 %v734_v19, %v641_v25  ;;  %v813_v25 = vmul.f32 %v1647_v14, %v1647_v14 }
 0x186   : > { %v871_v31 = vadd.f32 %v870_v29, %v808_v30  ;;  %v736_v32 = vadd.f32 %v735_v50, %v643_v59  ;;  %v816_v59 = vmul.f32 %v1665_v33, %v1665_v33 }
 0x188   : > { %v872_v36 = vadd.f32 %v871_v31, %v809_v34  ;;  %v737_v26 = vadd.f32 %v736_v32, %v646_v17  ;;  %v823_v17 = vmul.f32 %v678_v21, %v678_v21 }
 0x18a   : > { %v873_v44 = vadd.f32 %v872_v36, %v810_v37  ;;  %v738_v41 = vadd.f32 %v737_v26, %v648_v35 }
 0x18c   : > { %v739_v7 = vadd.f32 %v738_v41, %v1641_v10  ;;  %v874_v42 = vadd.f32 %v873_v44, %v811_v9  ;;  %v683_v10 = vpop.f32.mrf.mxu3  ;;  %v691_v44 = vld [vmem:[#allocation7] sm:$0x1] }
 0x18d   : > { %v825_v24 = vmul.f32 %v683_v10, %v683_v10 }
 0x18e   : > { %v740_v40 = vadd.f32 %v739_v7, %v1647_v14  ;;  %v875_v45 = vadd.f32 %v874_v42, %v812_v43  ;;  %v763_v43 = vld [vmem:[#allocation8] sm:$0x1] }
 0x190   : > { %v741_v52 = vadd.f32 %v740_v40, %v1653_v18  ;;  %v876_v47 = vadd.f32 %v875_v45, %v813_v25 }
 0x192   : > { %v742_v49 = vadd.f32 %v741_v52, %v1659_v22  ;;  %v877_v51 = vadd.f32 %v876_v47, %v814_v46 }
 0x194   : > { %v743_v1 = vadd.f32 %v742_v49, %v1665_v33  ;;  %v878_v14 = vadd.f32 %v877_v51, %v815_v57  ;;  %v820_v33 = vmul.f32 %v1714_v6, %v1714_v6 }
 0x196   : > { %v744_v2 = vadd.f32 %v743_v1, %v1671_v55  ;;  %v879_v18 = vadd.f32 %v878_v14, %v816_v59  ;;  %v686_v55 = vpop.f32.mrf.mxu3 }
 0x198   : > { %v880_v5 = vadd.f32 %v879_v18, %v817_v53  ;;  %v745_v22 = vadd.f32 %v744_v2, %v1678_v23  ;;  %v822_v23 = vmul.f32 %v1736_v54, %v1736_v54 }
 0x19a   : > { %v746_v58 = vadd.f32 %v745_v22, %v1697_v48  ;;  %v881_v8 = vadd.f32 %v880_v5, %v818_v56 }
 0x19c   : > { %v747_v60 = vadd.f32 %v746_v58, %v1714_v6  ;;  %v882_v61 = vadd.f32 %v881_v8, %v819_v4  ;;  %v824_v6 = vmul.f32 %v681_v38, %v681_v38 }
 0x19e   : > { %v748_v62 = vadd.f32 %v747_v60, %v1719_v39  ;;  %v883_v63 = vadd.f32 %v882_v61, %v820_v33  ;;  %v688_v19 = vpop.f32.mrf.mxu3  ;;  %v826_v39 = vmul.f32 %v686_v55, %v686_v55 }
 0x19f   : > { %v827_v30 = vmul.f32 %v688_v19, %v688_v19 }
 0x1a0   : > { %v749_v0 = vadd.f32 %v748_v62, %v1736_v54  ;;  %v884_v48 = vadd.f32 %v883_v63, %v821_v13 }
 0x1a2   : > { %v750_v11 = vadd.f32 %v749_v0, %v678_v21  ;;  %v885_v3 = vadd.f32 %v884_v48, %v822_v23 }
 0x1a4   : > { %v886_v16 = vadd.f32 %v885_v3, %v823_v17  ;;  %v751_v12 = vadd.f32 %v750_v11, %v681_v38 }
 0x1a6   : > { %v887_v15 = vadd.f32 %v886_v16, %v824_v6  ;;  %v752_v28 = vadd.f32 %v751_v12, %v683_v10 }
 0x1a8   : > { %v888_v27 = vadd.f32 %v887_v15, %v825_v24  ;;  %v753_v20 = vadd.f32 %v752_v28, %v686_v55 }
 0x1aa   : > { %v889_v29 = vadd.f32 %v888_v27, %v826_v39  ;;  %v754_v50 = vadd.f32 %v753_v20, %v688_v19 }
 0x1ac   : > { %v755_v31 = vrot.slane %v754_v50, 4  ;;  %v890_v54 = vadd.f32 %v889_v29, %v827_v30 }
 0x1ae   : > { %v756_v32 = vadd.f32 %v755_v31, %v754_v50  ;;  %v891_v34 = vrot.slane %v890_v54, 4 }
 0x1b0   : > { %v757_v21 = vrot.slane %v756_v32, 2  ;;  %v892_v35 = vadd.f32 %v891_v34, %v890_v54 }
 0x1b2   : > { %v758_v36 = vadd.f32 %v757_v21, %v756_v32  ;;  %v893_v26 = vrot.slane %v892_v35, 2 }
 0x1b4   : > { %v759_v37 = vrot.slane %v758_v36, 1  ;;  %v894_v38 = vadd.f32 %v893_v26, %v892_v35 }
 0x1b6   : > { %v760_v41 = vadd.f32 %v759_v37, %v758_v36  ;;  %v895_v9 = vrot.slane %v894_v38, 1 }
 0x1b8   : > { %v761_v7 = vadd.f32 %v760_v41, %v691_v44  ;;  %v896_v42 = vadd.f32 %v895_v9, %v894_v38 }
 0x1ba   : > { %762 = vst [vmem:[#allocation7] sm:$0x1] %v761_v7  ;;  %v897_v25 = vadd.f32 %v896_v42, %v763_v43 }
 0x1bb   : > { %1241 = dma.vmem_to_hbm [thread:$0]  (%p1259_p1), %s906_s21, 16, %s908_s7, [#allocation4]  }
 0x1bc   : > { %898 = vst [vmem:[#allocation8] sm:$0x1] %v897_v25 }
 0x1bd   : > { %1243 = dma.vmem_to_hbm [thread:$0]  (%p1259_p1), %s918_s9, 16, %s920_s12, [#allocation9]  }
 0x1be   : > { %1442 = dma.done.wait (%p1259_p1), [#allocation4], 16  }
 0x1bf   : > { %1444 = vsyncadd (%p1259_p1), [#allocation4], 4294967280 }
 0x1c0   : > { %1446 = dma.done.wait (%p1259_p1), [#allocation9], 16  }
 0x1c1   : > { %1448 = vsyncadd (%p1259_p1), [#allocation9], 4294967280 }
 0x1c2 PF: > { %p17_p4 = scmp.ge.s32.totalorder %s1535_s24, 4   ;;  %s1828_s12 = smov %s1455_s13 }
 0x1c3   : > { %s1829_s13 = smov %s1459_s14  ;;  %s1830_s14 = smov %s1548_s29 }
 0x1c4   : > { %s1831_s15 = smov %s1535_s24  ;;  %19 = sbr.rel (!%p17_p4) target bundleno = 6 (0x6), region = 81 }
 0x1c9   :  { %938 = vsyncpa [#allocation3], 1 }
 0x1ca   :  { %940 = vsyncpa [#allocation3 + $0x1], 1 }
 0x1cb   :  { %941 = vsyncpa [#allocation6], 1 }
 0x1cc   :  { %942 = vsyncpa [#allocation4], 1 }
 0x1cd   :  { %944 = vsyncpa [#allocation4 + $0x1], 1 }
 0x1ce   :  { %945 = vsyncpa [#allocation9], 1 }

</bundles_post_ra>
